<compile_context>
chip_gen: v5e
topology: v5e:2x2
jax: 0.10.0
libtpu: 0.0.40
codegen_flags: <defaults>
</compile_context>

<pallas_src>
import functools

import numpy as np
import jax
import jax.numpy as jnp
from jax import lax
from jax.experimental import pallas as pl
from jax.experimental.pallas import tpu as pltpu

_MiB = 1024 * 1024


# ----------------------------------------------------------------------------
# helpers
# ----------------------------------------------------------------------------

def _round_up(x, m):
    return ((x + m - 1) // m) * m


def _scoped_vmem_limit_bytes():
    """Generation-adaptive scoped-VMEM budget (v5e/v6e: 128 MiB, v7x: 64 MiB per TC)."""
    cap = None
    try:
        info = pltpu.get_tpu_info()
        cap = int(getattr(info, "vmem_capacity_bytes", 0)) or None
    except Exception:
        cap = None
    kind = ""
    try:
        kind = jax.devices()[0].device_kind.lower()
    except Exception:
        pass
    if cap is None:
        cap = 128 * _MiB if ("v5" in kind or "v6" in kind) else 64 * _MiB
    if "v7" in kind:
        # vmem_capacity may be per-chip; per-TC VMEM on v7x is 64 MiB.
        cap = min(cap, 64 * _MiB)
    # leave headroom for compiler internal scratch / output buffers
    return max(32 * _MiB, min(cap - 16 * _MiB, 112 * _MiB))


def _sigmoid_and_focal(x, t, alpha, gamma):
    """Exact, numerically stable sigmoid + focal loss (one EUP exp shared by both)."""
    ax = jnp.abs(x)
    e = jnp.exp(-ax)                                    # single EUP exp
    inv1pe = 1.0 / (1.0 + e)                            # exact (kernel is not VPU-bound)
    p = jnp.where(x >= 0, inv1pe, e * inv1pe)           # sigmoid(x)
    ce = jnp.maximum(x, 0.0) - x * t + jnp.log1p(e)     # stable BCE-with-logits
    p_t = p * t + (1.0 - p) * (1.0 - t)
    m = 1.0 - p_t
    mod = m * m if gamma == 2.0 else m ** gamma
    loss = ce * mod
    if alpha >= 0:
        loss = (alpha * t + (1.0 - alpha) * (1.0 - t)) * loss
    return p, loss


# ----------------------------------------------------------------------------
# Kernel 1: fused mask focal + dice, grid = (frames, instance tiles), both parallel
# ----------------------------------------------------------------------------

def _mask_kernel(src_ref, tgt_ref, focal_ref, dice_ref, *, alpha, gamma, n_rows, tile_rows):
    j = pl.program_id(1)
    x = src_ref[0].astype(jnp.float32)                      # (TN, HW)
    t = tgt_ref[0].astype(jnp.float32)

    # ragged last tile: zero-select inputs + zero the per-row contributions
    row = lax.broadcasted_iota(jnp.int32, (tile_rows, 1), 0) + j * tile_rows
    valid = row < n_rows                                    # (TN, 1) bool
    vf = valid.astype(jnp.float32)
    x = jnp.where(valid, x, 0.0)                            # also scrubs OOB garbage / NaN
    t = jnp.where(valid, t, 0.0)

    p, loss = _sigmoid_and_focal(x, t, alpha, gamma)

    # focal: per-row sum, masked, then scalar partial sum for this (frame, tile)
    frow = jnp.sum(loss, axis=-1, keepdims=True) * vf       # (TN, 1)
    focal_ref[0, 0] = jnp.sum(frow, axis=0, keepdims=True)  # (1, 1)

    # dice: per-row reductions are complete (full HW row lives inside the tile)
    pt = jnp.sum(p * t, axis=-1, keepdims=True)
    ps = jnp.sum(p, axis=-1, keepdims=True)
    ts = jnp.sum(t, axis=-1, keepdims=True)
    drow = (1.0 - (2.0 * pt + 1.0) / (ps + ts + 1.0)) * vf
    dice_ref[0, 0] = jnp.sum(drow, axis=0, keepdims=True)


def fused_mask_losses(src, tgt, alpha=0.25, gamma=2.0):
    """src/tgt: [T, N, HW] (mask logits / {0,1} targets) in their storage dtype (bf16 ok).
    Returns per-frame (focal_sum[T], dice_sum[T])."""
    T, N, HW = src.shape
    if HW % 128 != 0:
        # Fallback only (typical (H/s)*(W/s) is already 128-divisible): minimal spatial pad.
        HWP = _round_up(HW, 128)
        src = jnp.pad(src, ((0, 0), (0, 0), (0, HWP - HW)), constant_values=-100.0)
        tgt = jnp.pad(tgt, ((0, 0), (0, 0), (0, HWP - HW)))
        HW = HWP

    scoped_limit = _scoped_vmem_limit_bytes()
    # 2 inputs x 2 pipeline buffers of TN rows each must fit the input budget
    bytes_per_row = HW * (src.dtype.itemsize + tgt.dtype.itemsize)
    input_budget = (scoped_limit * 3) // 4
    max_rows = max(16, ((input_budget // (2 * bytes_per_row)) // 16) * 16)  # mult of 16 (bf16 pack)
    if N <= max_rows:
        TN = N                    # block == full instance dim: no ragged tile at all
    else:
        TN = int(max_rows)
    NTILES = pl.cdiv(N, TN)

    kernel = functools.partial(_mask_kernel, alpha=float(alpha), gamma=float(gamma),
                               n_rows=int(N), tile_rows=int(TN))
    focal_p, dice_p = pl.pallas_call(
        kernel,
        out_shape=(jax.ShapeDtypeStruct((T, NTILES, 1, 1), jnp.float32),
                   jax.ShapeDtypeStruct((T, NTILES, 1, 1), jnp.float32)),
        grid=(T, NTILES),
        in_specs=[pl.BlockSpec((1, TN, HW), lambda t, j: (t, j, 0)),
                  pl.BlockSpec((1, TN, HW), lambda t, j: (t, j, 0))],
        out_specs=(pl.BlockSpec((1, 1, 1, 1), lambda t, j: (t, j, 0, 0)),
                   pl.BlockSpec((1, 1, 1, 1), lambda t, j: (t, j, 0, 0))),
        compiler_params=pltpu.CompilerParams(
            dimension_semantics=("parallel", "parallel"),
            vmem_limit_bytes=int(scoped_limit)),
    )(src, tgt)
    # tiny (T x NTILES) reduction in plain JAX
    return jnp.sum(focal_p[:, :, 0, 0], axis=1), jnp.sum(dice_p[:, :, 0, 0], axis=1)


# ----------------------------------------------------------------------------
# Kernel 2: fused per-frame small losses (lane-dense cls focal + box L1 + GIoU), grid = (frames,)
# ----------------------------------------------------------------------------

def _cls_box_kernel(ld_ref, oh_ref, sb_ref, tb_ref, focal_ref, l1_ref, giou_ref, *, alpha, gamma):
    # ---- classification focal on a lane-dense [RP, 128] slab ----
    x = ld_ref[0].astype(jnp.float32)          # (RP, 128)
    t = oh_ref[...].astype(jnp.float32)        # (RP, 128) resident (same for all frames)
    _, loss = _sigmoid_and_focal(x, t, alpha, gamma)
    f = jnp.sum(loss, axis=-1, keepdims=True)                 # (RP, 1)
    focal_ref[0] = jnp.sum(f, axis=0, keepdims=True)          # (1, 1)

    # ---- box L1 + GIoU (coords on sublanes, boxes on lanes) ----
    eps = 1e-7
    s = sb_ref[0].astype(jnp.float32)          # (4, M)
    b = tb_ref[0].astype(jnp.float32)
    l1_ref[0] = jnp.sum(jnp.abs(s - b), keepdims=True)        # (1, 1)

    def xyxy(v):
        cx, cy, w, h = v[0:1], v[1:2], v[2:3], v[3:4]
        return cx - 0.5 * w, cy - 0.5 * h, cx + 0.5 * w, cy + 0.5 * h

    sx0, sy0, sx1, sy1 = xyxy(s)
    tx0, ty0, tx1, ty1 = xyxy(b)
    area_s = (sx1 - sx0) * (sy1 - sy0)
    area_t = (tx1 - tx0) * (ty1 - ty0)
    ix0 = jnp.maximum(sx0, tx0); iy0 = jnp.maximum(sy0, ty0)
    ix1 = jnp.minimum(sx1, tx1); iy1 = jnp.minimum(sy1, ty1)
    inter = jnp.maximum(ix1 - ix0, 0.0) * jnp.maximum(iy1 - iy0, 0.0)
    union = area_s + area_t - inter
    iou = inter / (union + eps)
    cx0 = jnp.minimum(sx0, tx0); cy0 = jnp.minimum(sy0, ty0)
    cx1 = jnp.maximum(sx1, tx1); cy1 = jnp.maximum(sy1, ty1)
    carea = jnp.maximum(cx1 - cx0, 0.0) * jnp.maximum(cy1 - cy0, 0.0)
    giou = iou - (carea - union) / (carea + eps)               # diagonal pairs only
    giou_ref[0] = jnp.sum(1.0 - giou, keepdims=True)           # (1, 1)


def cls_and_box_losses(logits, onehot, src_boxes, tgt_boxes, alpha=0.25, gamma=2.0):
    """logits: [T,B,Q,C]; onehot: [B,Q,C]; src/tgt_boxes: [T,4,M] cxcywh.
    Returns per-frame (focal_sum[T], l1_sum[T], giou_sum[T])."""
    T, B, Q, C = logits.shape
    n = B * Q * C
    RP = _round_up(n, 128) // 128
    pad = RP * 128 - n
    M = src_boxes.shape[-1]

    # lane-dense slabs (tiny); pad logits with -100 / targets with 0 -> exactly zero contribution
    logits_dense = jnp.pad(logits.reshape(T, n), ((0, 0), (0, pad)),
                           constant_values=-100.0).reshape(T, RP, 128)
    onehot_dense = jnp.pad(onehot.astype(jnp.float32).reshape(n), (0, pad)).reshape(RP, 128)

    kernel = functools.partial(_cls_box_kernel, alpha=float(alpha), gamma=float(gamma))
    focal, l1, giou = pl.pallas_call(
        kernel,
        out_shape=(jax.ShapeDtypeStruct((T, 1, 1), jnp.float32),
                   jax.ShapeDtypeStruct((T, 1, 1), jnp.float32),
                   jax.ShapeDtypeStruct((T, 1, 1), jnp.float32)),
        grid=(T,),
        in_specs=[pl.BlockSpec((1, RP, 128), lambda t: (t, 0, 0)),
                  pl.BlockSpec((RP, 128), lambda t: (0, 0)),        # resident across frames
                  pl.BlockSpec((1, 4, M), lambda t: (t, 0, 0)),
                  pl.BlockSpec((1, 4, M), lambda t: (t, 0, 0))],
        out_specs=(pl.BlockSpec((1, 1, 1), lambda t: (t, 0, 0)),
                   pl.BlockSpec((1, 1, 1), lambda t: (t, 0, 0)),
                   pl.BlockSpec((1, 1, 1), lambda t: (t, 0, 0))),
        compiler_params=pltpu.CompilerParams(dimension_semantics=("parallel",)),
    )(logits_dense, onehot_dense,
      src_boxes.astype(jnp.float32), tgt_boxes.astype(jnp.float32))
    return focal[:, 0, 0], l1[:, 0, 0], giou[:, 0, 0]


# ----------------------------------------------------------------------------
# SetCriterion glue (plain JAX bookkeeping around the Pallas kernels)
# ----------------------------------------------------------------------------

class SetCriterionPallas:
    def __init__(self, num_classes, losses, focal_alpha=0.25, mask_out_stride=4,
                 num_frames=1, batch_size=2):
        self.num_classes = num_classes
        self.losses = losses
        self.focal_alpha = focal_alpha
        self.mask_out_stride = mask_out_stride
        self.num_frames = num_frames
        self.batch_size = batch_size
        # TODO(synk): Hungarian matcher / SupCon are external dependencies; indices are passed in.

    # ---- permutation helpers (static numpy bookkeeping) ----
    @staticmethod
    def _get_src_permutation_idx(indices):
        batch_idx = np.concatenate(
            [np.full_like(np.asarray(src), i) for i, (src, _) in enumerate(indices)])
        src_idx = np.concatenate([np.asarray(src) for src, _ in indices])
        return batch_idx, src_idx

    @staticmethod
    def _get_tgt_permutation_idx(indices):
        batch_idx = np.concatenate(
            [np.full_like(np.asarray(tgt), i) for i, (_, tgt) in enumerate(indices)])
        tgt_idx = np.concatenate([np.asarray(tgt) for _, tgt in indices])
        return batch_idx, tgt_idx

    @staticmethod
    def _get_tgt_instance_idx(tgt_idx):
        batch_idx, inst_idx = tgt_idx
        inst_idx = inst_idx.copy()
        previous_b = 0
        batch_offset = 0
        for i, (b, idv) in enumerate(zip(batch_idx, inst_idx)):
            if b != previous_b:
                batch_offset = i
                previous_b = b
            inst_idx[i] = idv + batch_offset
        return batch_idx, inst_idx

    # ---- fused labels + boxes (one small Pallas call, grid over frames) ----
    def _cls_and_box_sums(self, outputs, targets, indices):
        nf = self.num_frames
        src_logits = outputs['pred_logits'][:nf]          # [T, B, Q, C]
        T, B, Q, C = src_logits.shape
        batch_idx, src_idx = self._get_src_permutation_idx(indices)

        target_classes_o = jnp.concatenate(
            [t['labels'][0][np.asarray(J)] for t, (_, J) in zip(targets, indices)])
        target_classes = jnp.full((B, Q), self.num_classes, dtype=jnp.int32)
        target_classes = target_classes.at[batch_idx, src_idx].set(
            target_classes_o.astype(jnp.int32))
        onehot = jax.nn.one_hot(target_classes, self.num_classes + 1,
                                dtype=jnp.float32)[..., :self.num_classes]   # [B, Q, C]

        pred_boxes = outputs['pred_boxes'][:nf]           # [T, B, Q, 4]
        src_b = pred_boxes[:, batch_idx, src_idx, :]                          # [T, M, 4]
        tgt_b = jnp.concatenate(
            [t['boxes'][:nf][:, np.asarray(J)] for t, (_, J) in zip(targets, indices)],
            axis=1)                                                           # [T, M, 4]
        src_b = jnp.transpose(src_b, (0, 2, 1))                               # [T, 4, M]
        tgt_b = jnp.transpose(tgt_b, (0, 2, 1))
        return cls_and_box_losses(src_logits, onehot, src_b, tgt_b,
                                  alpha=self.focal_alpha, gamma=2.0)

    # ---- cardinality: no-grad logging metric, plain JAX (trivial argmax) ----
    def _cardinality(self, outputs, targets):
        nf = self.num_frames
        logits = outputs['pred_logits'][:nf]              # [T, B, Q, C]
        C = logits.shape[-1]
        tgt_lengths = jnp.array([t['labels'][0].shape[0] for t in targets], jnp.float32)
        card = jnp.sum((jnp.argmax(logits, axis=-1) != C - 1).astype(jnp.float32), axis=2)
        return jnp.mean(jnp.abs(card - tgt_lengths[None, :]))

    # ---- masks (fused focal + dice, gridded, narrow-dtype streaming) ----
    def loss_masks(self, outputs, targets, indices, num_boxes, target_masks):
        pred_masks = outputs['pred_masks']                # [T, N, h, w] (logits, bf16 ok)
        tgt_idx = self._get_tgt_permutation_idx(indices)
        _, inst_idx = self._get_tgt_instance_idx(tgt_idx)
        start = self.mask_out_stride // 2
        tm = target_masks[:, :, start::self.mask_out_stride, start::self.mask_out_stride]
        assert tm.shape[2] * self.mask_out_stride == target_masks.shape[2]
        assert tm.shape[3] * self.mask_out_stride == target_masks.shape[3]
        nf = self.num_frames
        _, N, h, w = pred_masks.shape
        # stream preds in their native (narrow) dtype; targets are {0,1} -> exact in bf16 and the
        # cast happens during the gather (which materializes anyway), not as an extra pass.
        src = pred_masks[:nf].reshape(nf, N, h * w)
        tgt = tm[:nf][:, inst_idx].astype(jnp.bfloat16).reshape(nf, N, h * w)
        focal_sums, dice_sums = fused_mask_losses(src, tgt, alpha=self.focal_alpha, gamma=2.0)
        loss_mask = jnp.sum(focal_sums / (h * w) / num_boxes[:nf]) / nf
        loss_dice = jnp.sum(dice_sums / num_boxes[:nf]) / nf
        return {'loss_mask': loss_mask, 'loss_dice': loss_dice}

    # ---- forward ----
    def forward(self, outputs, targets, indices_list, valid_ratios=None):
        # num_boxes = num_classes = clamp(sum of valid_cls / world_size, min=1)  (world_size == 1)
        # TODO(synk): torch.distributed all_reduce of num_boxes is omitted (single host).
        num_classes_vec = jnp.maximum(
            jnp.sum(jnp.concatenate([t['valid_cls'] for t in targets], axis=-1), axis=-1),
            1.0)                                          # [T]
        num_boxes = num_classes_vec
        # TODO(synk): nested_tensor_from_tensor_list spatial padding (size_divisibility=32) is
        #             skipped; synthetic masks are already 32-divisible and instance-stacked here.
        target_masks = jnp.concatenate([t['masks'] for t in targets], axis=1)  # [T, Ntot, H, W]

        indices = indices_list[-1]
        nf = self.num_frames
        want = set(self.losses)
        losses = {}

        if 'labels' in want or 'boxes' in want:
            focal_sums, l1_sums, giou_sums = self._cls_and_box_sums(outputs, targets, indices)
            if 'labels' in want:
                # reference: sum / Q / num_classes[i] * Q == sum / num_classes[i]
                losses['loss_ce'] = jnp.sum(focal_sums / num_classes_vec[:nf]) / nf
            if 'boxes' in want:
                losses['loss_bbox'] = (jnp.sum(l1_sums) / nf) / num_boxes[0]
                losses['loss_giou'] = (jnp.sum(giou_sums) / nf) / num_boxes[0]
        if 'cardinality' in want:
            losses['cardinality_error'] = self._cardinality(outputs, targets)
        if 'masks' in want:
            losses.update(self.loss_masks(outputs, targets, indices, num_boxes, target_masks))
        # TODO(synk): aux_outputs / enc_outputs / aux_outputs_enc / supcon branches omitted
        #             (not present in these synthetic outputs; they reuse the same kernels).
        return losses


# ----------------------------------------------------------------------------
# main
# ----------------------------------------------------------------------------

if __name__ == "__main__":
    key = jax.random.PRNGKey(0)
    T, B, Q, C = 2, 2, 8, 4          # frames, batch, queries, classes
    NINST = 2                        # GT instances per batch element
    H = W = 64                       # full-res mask size (divisible by 32; (H/s)*(W/s) % 128 == 0)
    stride = 4
    h, w = H // stride, W // stride

    ks = jax.random.split(key, 8)
    pred_logits = jax.random.normal(ks[0], (T, B, Q, C), jnp.float32)
    box_c = jax.random.uniform(ks[1], (T, B, Q, 2), minval=0.3, maxval=0.7)
    box_wh = jax.random.uniform(ks[2], (T, B, Q, 2), minval=0.1, maxval=0.3)
    pred_boxes = jnp.concatenate([box_c, box_wh], axis=-1)
    total_matched = B * NINST
    pred_masks = jax.random.normal(
        ks[3], (T, total_matched, h, w), jnp.float32).astype(jnp.bfloat16)   # bf16 streaming

    outputs = {'pred_logits': pred_logits, 'pred_boxes': pred_boxes, 'pred_masks': pred_masks}

    targets = []
    for b in range(B):
        kb = jax.random.split(ks[4 + b], 4)
        labels = jax.random.randint(kb[0], (T, NINST), 0, C)
        tbc = jax.random.uniform(kb[1], (T, NINST, 2), minval=0.3, maxval=0.7)
        tbwh = jax.random.uniform(kb[2], (T, NINST, 2), minval=0.1, maxval=0.3)
        boxes = jnp.concatenate([tbc, tbwh], axis=-1)
        masks = (jax.random.uniform(kb[3], (T, NINST, H, W)) > 0.5).astype(jnp.float32)
        valid_cls = jnp.ones((T, NINST), jnp.float32)
        targets.append({'labels': labels, 'boxes': boxes, 'masks': masks, 'valid_cls': valid_cls})

    # Hungarian matching result (normally produced by the matcher): (src queries, tgt instances)
    indices = [(np.array([1, 5]), np.array([0, 1])),
               (np.array([2, 6]), np.array([1, 0]))]
    indices_list = [indices]

    criterion = SetCriterionPallas(
        num_classes=C,
        losses=['labels', 'cardinality', 'boxes', 'masks'],
        focal_alpha=0.25, mask_out_stride=stride, num_frames=T, batch_size=B)

    losses = criterion.forward(outputs, targets, indices_list, valid_ratios=None)
    for k in sorted(losses):
        jax.block_until_ready(losses[k])
    print("KERNEL_OK")
</pallas_src>

<mosaic_0001>
module attributes {stable_mosaic.version = 11 : i64} {
  func.func @_cls_box_kernel(%arg0: i32, %arg1: memref<1x1x128xf32, #tpu.memory_space<vmem>>, %arg2: memref<1x128xf32, #tpu.memory_space<vmem>>, %arg3: memref<1x4x4xf32, #tpu.memory_space<vmem>>, %arg4: memref<1x4x4xf32, #tpu.memory_space<vmem>>, %arg5: memref<1x1x1xf32, #tpu.memory_space<vmem>>, %arg6: memref<1x1x1xf32, #tpu.memory_space<vmem>>, %arg7: memref<1x1x1xf32, #tpu.memory_space<vmem>>) attributes {dimension_semantics = [#tpu.dimension_semantics<parallel>], iteration_bounds = array<i64: 2>, scalar_prefetch = 0 : i64, scratch_operands = 0 : i64, tpu.core_type = #tpu.core_type<tc>, window_params = [{transform_indices = @transform_0, window_bounds = array<i64: 1, 1, 128>}, {pipeline_mode = #tpu.pipeline_mode<synchronous>, transform_indices = @transform_1, window_bounds = array<i64: 1, 128>}, {transform_indices = @transform_2, window_bounds = array<i64: 1, 4, 4>}, {transform_indices = @transform_3, window_bounds = array<i64: 1, 4, 4>}, {transform_indices = @transform_4, window_bounds = array<i64: 1, 1, 1>}, {transform_indices = @transform_5, window_bounds = array<i64: 1, 1, 1>}, {transform_indices = @transform_6, window_bounds = array<i64: 1, 1, 1>}]} {
    %c0 = arith.constant 0 : index
    %c0_0 = arith.constant 0 : index
    %c0_1 = arith.constant 0 : index
    %0 = vector.load %arg1[%c0, %c0_0, %c0_1] : memref<1x1x128xf32, #tpu.memory_space<vmem>>, vector<1x1x128xf32>
    %1 = vector.shape_cast %0 : vector<1x1x128xf32> to vector<1x128xf32>
    %c0_2 = arith.constant 0 : index
    %c0_3 = arith.constant 0 : index
    %2 = vector.load %arg2[%c0_2, %c0_3] : memref<1x128xf32, #tpu.memory_space<vmem>>, vector<1x128xf32>
    %3 = math.absf %1 : vector<1x128xf32>
    %cst = arith.constant 0.000000e+00 : f32
    %4 = vector.broadcast %cst : f32 to vector<1x128xf32>
    %5 = arith.subf %4, %3 : vector<1x128xf32>
    %6 = math.exp %5 : vector<1x128xf32>
    %cst_4 = arith.constant 1.000000e+00 : f32
    %7 = vector.broadcast %cst_4 : f32 to vector<1x128xf32>
    %8 = arith.addf %7, %6 : vector<1x128xf32>
    %cst_5 = arith.constant 1.000000e+00 : f32
    %9 = vector.broadcast %cst_5 : f32 to vector<1x128xf32>
    %10 = arith.divf %9, %8 : vector<1x128xf32>
    %cst_6 = arith.constant 0.000000e+00 : f32
    %11 = vector.broadcast %cst_6 : f32 to vector<1x128xf32>
    %12 = arith.cmpf oge, %1, %11 : vector<1x128xf32>
    %13 = arith.mulf %6, %10 : vector<1x128xf32>
    %14 = arith.select %12, %10, %13 : vector<1x128xi1>, vector<1x128xf32>
    %cst_7 = arith.constant 0.000000e+00 : f32
    %15 = vector.broadcast %cst_7 : f32 to vector<1x128xf32>
    %16 = arith.maximumf %1, %15 : vector<1x128xf32>
    %17 = arith.mulf %1, %2 : vector<1x128xf32>
    %18 = arith.subf %16, %17 : vector<1x128xf32>
    %19 = math.log1p %6 : vector<1x128xf32>
    %20 = arith.addf %18, %19 : vector<1x128xf32>
    %21 = arith.mulf %14, %2 : vector<1x128xf32>
    %cst_8 = arith.constant 1.000000e+00 : f32
    %22 = vector.broadcast %cst_8 : f32 to vector<1x128xf32>
    %23 = arith.subf %22, %14 : vector<1x128xf32>
    %cst_9 = arith.constant 1.000000e+00 : f32
    %24 = vector.broadcast %cst_9 : f32 to vector<1x128xf32>
    %25 = arith.subf %24, %2 : vector<1x128xf32>
    %26 = arith.mulf %23, %25 : vector<1x128xf32>
    %27 = arith.addf %21, %26 : vector<1x128xf32>
    %cst_10 = arith.constant 1.000000e+00 : f32
    %28 = vector.broadcast %cst_10 : f32 to vector<1x128xf32>
    %29 = arith.subf %28, %27 : vector<1x128xf32>
    %30 = arith.mulf %29, %29 : vector<1x128xf32>
    %31 = arith.mulf %20, %30 : vector<1x128xf32>
    %cst_11 = arith.constant 2.500000e-01 : f32
    %32 = vector.broadcast %cst_11 : f32 to vector<1x128xf32>
    %33 = arith.mulf %32, %2 : vector<1x128xf32>
    %cst_12 = arith.constant 1.000000e+00 : f32
    %34 = vector.broadcast %cst_12 : f32 to vector<1x128xf32>
    %35 = arith.subf %34, %2 : vector<1x128xf32>
    %cst_13 = arith.constant 7.500000e-01 : f32
    %36 = vector.broadcast %cst_13 : f32 to vector<1x128xf32>
    %37 = arith.mulf %36, %35 : vector<1x128xf32>
    %38 = arith.addf %33, %37 : vector<1x128xf32>
    %39 = arith.mulf %38, %31 : vector<1x128xf32>
    %cst_14 = arith.constant dense<0.000000e+00> : vector<1xf32>
    %40 = vector.multi_reduction <add>, %39, %cst_14 [1] : vector<1x128xf32> to vector<1xf32>
    %41 = vector.shape_cast %40 : vector<1xf32> to vector<1x1xf32>
    %cst_15 = arith.constant dense<0.000000e+00> : vector<1xf32>
    %42 = vector.multi_reduction <add>, %41, %cst_15 [0] : vector<1x1xf32> to vector<1xf32>
    %43 = vector.shape_cast %42 : vector<1xf32> to vector<1x1xf32>
    %c0_16 = arith.constant 0 : index
    %c0_17 = arith.constant 0 : index
    %c0_18 = arith.constant 0 : index
    %44 = vector.load %arg5[%c0_16, %c0_17, %c0_18] : memref<1x1x1xf32, #tpu.memory_space<vmem>>, vector<1x1x1xf32>
    %45 = vector.shape_cast %44 : vector<1x1x1xf32> to vector<1x1xf32>
    %46 = vector.shape_cast %43 : vector<1x1xf32> to vector<1x1x1xf32>
    tpu.vector_store %arg5[%c0_16, %c0_17, %c0_18], %46 {strides = array<i32>} : memref<1x1x1xf32, #tpu.memory_space<vmem>>, vector<1x1x1xf32>,
    %c0_19 = arith.constant 0 : index
    %c0_20 = arith.constant 0 : index
    %c0_21 = arith.constant 0 : index
    %47 = vector.load %arg3[%c0_19, %c0_20, %c0_21] : memref<1x4x4xf32, #tpu.memory_space<vmem>>, vector<1x4x4xf32>
    %48 = vector.shape_cast %47 : vector<1x4x4xf32> to vector<4x4xf32>
    %c0_22 = arith.constant 0 : index
    %c0_23 = arith.constant 0 : index
    %c0_24 = arith.constant 0 : index
    %49 = vector.load %arg4[%c0_22, %c0_23, %c0_24] : memref<1x4x4xf32, #tpu.memory_space<vmem>>, vector<1x4x4xf32>
    %50 = vector.shape_cast %49 : vector<1x4x4xf32> to vector<4x4xf32>
    %51 = arith.subf %48, %50 : vector<4x4xf32>
    %52 = math.absf %51 : vector<4x4xf32>
    %53 = vector.shape_cast %52 : vector<4x4xf32> to vector<1x4x4xf32>
    %cst_25 = arith.constant dense<0.000000e+00> : vector<1xf32>
    %54 = vector.multi_reduction <add>, %53, %cst_25 [1, 2] : vector<1x4x4xf32> to vector<1xf32>
    %55 = vector.shape_cast %54 : vector<1xf32> to vector<1x1x1xf32>
    %56 = vector.extract %55[0, 0, 0] : f32 from vector<1x1x1xf32>
    %57 = vector.broadcast %56 : f32 to vector<1x1xf32>
    %c0_26 = arith.constant 0 : index
    %c0_27 = arith.constant 0 : index
    %c0_28 = arith.constant 0 : index
    %58 = vector.load %arg6[%c0_26, %c0_27, %c0_28] : memref<1x1x1xf32, #tpu.memory_space<vmem>>, vector<1x1x1xf32>
    %59 = vector.shape_cast %58 : vector<1x1x1xf32> to vector<1x1xf32>
    %60 = vector.shape_cast %57 : vector<1x1xf32> to vector<1x1x1xf32>
    tpu.vector_store %arg6[%c0_26, %c0_27, %c0_28], %60 {strides = array<i32>} : memref<1x1x1xf32, #tpu.memory_space<vmem>>, vector<1x1x1xf32>,
    %61 = vector.extract_strided_slice %48 {offsets = [0, 0], sizes = [1, 4], strides = [1, 1]} : vector<4x4xf32> to vector<1x4xf32>
    %62 = vector.extract_strided_slice %48 {offsets = [1, 0], sizes = [1, 4], strides = [1, 1]} : vector<4x4xf32> to vector<1x4xf32>
    %63 = vector.extract_strided_slice %48 {offsets = [2, 0], sizes = [1, 4], strides = [1, 1]} : vector<4x4xf32> to vector<1x4xf32>
    %64 = vector.extract_strided_slice %48 {offsets = [3, 0], sizes = [1, 4], strides = [1, 1]} : vector<4x4xf32> to vector<1x4xf32>
    %cst_29 = arith.constant 5.000000e-01 : f32
    %65 = vector.broadcast %cst_29 : f32 to vector<1x4xf32>
    %66 = arith.mulf %65, %63 : vector<1x4xf32>
    %67 = arith.subf %61, %66 : vector<1x4xf32>
    %cst_30 = arith.constant 5.000000e-01 : f32
    %68 = vector.broadcast %cst_30 : f32 to vector<1x4xf32>
    %69 = arith.mulf %68, %64 : vector<1x4xf32>
    %70 = arith.subf %62, %69 : vector<1x4xf32>
    %cst_31 = arith.constant 5.000000e-01 : f32
    %71 = vector.broadcast %cst_31 : f32 to vector<1x4xf32>
    %72 = arith.mulf %71, %63 : vector<1x4xf32>
    %73 = arith.addf %61, %72 : vector<1x4xf32>
    %cst_32 = arith.constant 5.000000e-01 : f32
    %74 = vector.broadcast %cst_32 : f32 to vector<1x4xf32>
    %75 = arith.mulf %74, %64 : vector<1x4xf32>
    %76 = arith.addf %62, %75 : vector<1x4xf32>
    %77 = vector.extract_strided_slice %50 {offsets = [0, 0], sizes = [1, 4], strides = [1, 1]} : vector<4x4xf32> to vector<1x4xf32>
    %78 = vector.extract_strided_slice %50 {offsets = [1, 0], sizes = [1, 4], strides = [1, 1]} : vector<4x4xf32> to vector<1x4xf32>
    %79 = vector.extract_strided_slice %50 {offsets = [2, 0], sizes = [1, 4], strides = [1, 1]} : vector<4x4xf32> to vector<1x4xf32>
    %80 = vector.extract_strided_slice %50 {offsets = [3, 0], sizes = [1, 4], strides = [1, 1]} : vector<4x4xf32> to vector<1x4xf32>
    %cst_33 = arith.constant 5.000000e-01 : f32
    %81 = vector.broadcast %cst_33 : f32 to vector<1x4xf32>
    %82 = arith.mulf %81, %79 : vector<1x4xf32>
    %83 = arith.subf %77, %82 : vector<1x4xf32>
    %cst_34 = arith.constant 5.000000e-01 : f32
    %84 = vector.broadcast %cst_34 : f32 to vector<1x4xf32>
    %85 = arith.mulf %84, %80 : vector<1x4xf32>
    %86 = arith.subf %78, %85 : vector<1x4xf32>
    %cst_35 = arith.constant 5.000000e-01 : f32
    %87 = vector.broadcast %cst_35 : f32 to vector<1x4xf32>
    %88 = arith.mulf %87, %79 : vector<1x4xf32>
    %89 = arith.addf %77, %88 : vector<1x4xf32>
    %cst_36 = arith.constant 5.000000e-01 : f32
    %90 = vector.broadcast %cst_36 : f32 to vector<1x4xf32>
    %91 = arith.mulf %90, %80 : vector<1x4xf32>
    %92 = arith.addf %78, %91 : vector<1x4xf32>
    %93 = arith.subf %73, %67 : vector<1x4xf32>
    %94 = arith.subf %76, %70 : vector<1x4xf32>
    %95 = arith.mulf %93, %94 : vector<1x4xf32>
    %96 = arith.subf %89, %83 : vector<1x4xf32>
    %97 = arith.subf %92, %86 : vector<1x4xf32>
    %98 = arith.mulf %96, %97 : vector<1x4xf32>
    %99 = arith.maximumf %67, %83 : vector<1x4xf32>
    %100 = arith.maximumf %70, %86 : vector<1x4xf32>
    %101 = arith.minimumf %73, %89 : vector<1x4xf32>
    %102 = arith.minimumf %76, %92 : vector<1x4xf32>
    %103 = arith.subf %101, %99 : vector<1x4xf32>
    %cst_37 = arith.constant 0.000000e+00 : f32
    %104 = vector.broadcast %cst_37 : f32 to vector<1x4xf32>
    %105 = arith.maximumf %103, %104 : vector<1x4xf32>
    %106 = arith.subf %102, %100 : vector<1x4xf32>
    %cst_38 = arith.constant 0.000000e+00 : f32
    %107 = vector.broadcast %cst_38 : f32 to vector<1x4xf32>
    %108 = arith.maximumf %106, %107 : vector<1x4xf32>
    %109 = arith.mulf %105, %108 : vector<1x4xf32>
    %110 = arith.addf %95, %98 : vector<1x4xf32>
    %111 = arith.subf %110, %109 : vector<1x4xf32>
    %cst_39 = arith.constant 1.000000e-07 : f32
    %112 = vector.broadcast %cst_39 : f32 to vector<1x4xf32>
    %113 = arith.addf %111, %112 : vector<1x4xf32>
    %114 = arith.divf %109, %113 : vector<1x4xf32>
    %115 = arith.minimumf %67, %83 : vector<1x4xf32>
    %116 = arith.minimumf %70, %86 : vector<1x4xf32>
    %117 = arith.maximumf %73, %89 : vector<1x4xf32>
    %118 = arith.maximumf %76, %92 : vector<1x4xf32>
    %119 = arith.subf %117, %115 : vector<1x4xf32>
    %cst_40 = arith.constant 0.000000e+00 : f32
    %120 = vector.broadcast %cst_40 : f32 to vector<1x4xf32>
    %121 = arith.maximumf %119, %120 : vector<1x4xf32>
    %122 = arith.subf %118, %116 : vector<1x4xf32>
    %cst_41 = arith.constant 0.000000e+00 : f32
    %123 = vector.broadcast %cst_41 : f32 to vector<1x4xf32>
    %124 = arith.maximumf %122, %123 : vector<1x4xf32>
    %125 = arith.mulf %121, %124 : vector<1x4xf32>
    %126 = arith.subf %125, %111 : vector<1x4xf32>
    %cst_42 = arith.constant 1.000000e-07 : f32
    %127 = vector.broadcast %cst_42 : f32 to vector<1x4xf32>
    %128 = arith.addf %125, %127 : vector<1x4xf32>
    %129 = arith.divf %126, %128 : vector<1x4xf32>
    %130 = arith.subf %114, %129 : vector<1x4xf32>
    %cst_43 = arith.constant 1.000000e+00 : f32
    %131 = vector.broadcast %cst_43 : f32 to vector<1x4xf32>
    %132 = arith.subf %131, %130 : vector<1x4xf32>
    %133 = vector.shape_cast %132 : vector<1x4xf32> to vector<1x1x4xf32>
    %cst_44 = arith.constant dense<0.000000e+00> : vector<1xf32>
    %134 = vector.multi_reduction <add>, %133, %cst_44 [1, 2] : vector<1x1x4xf32> to vector<1xf32>
    %135 = vector.shape_cast %134 : vector<1xf32> to vector<1x1x1xf32>
    %136 = vector.extract %135[0, 0, 0] : f32 from vector<1x1x1xf32>
    %137 = vector.broadcast %136 : f32 to vector<1x1xf32>
    %c0_45 = arith.constant 0 : index
    %c0_46 = arith.constant 0 : index
    %c0_47 = arith.constant 0 : index
    %138 = vector.load %arg7[%c0_45, %c0_46, %c0_47] : memref<1x1x1xf32, #tpu.memory_space<vmem>>, vector<1x1x1xf32>
    %139 = vector.shape_cast %138 : vector<1x1x1xf32> to vector<1x1xf32>
    %140 = vector.shape_cast %137 : vector<1x1xf32> to vector<1x1x1xf32>
    tpu.vector_store %arg7[%c0_45, %c0_46, %c0_47], %140 {strides = array<i32>} : memref<1x1x1xf32, #tpu.memory_space<vmem>>, vector<1x1x1xf32>,
    return
  }
  func.func @transform_0(%arg0: i32) -> (i32, i32, i32) {
    %c0_i32 = arith.constant 0 : i32
    %c0_i32_0 = arith.constant 0 : i32
    %c0_i32_1 = arith.constant 0 : i32
    return %arg0, %c0_i32, %c0_i32_0 : i32, i32, i32
  }
  func.func @transform_1(%arg0: i32) -> (i32, i32) {
    %c0_i32 = arith.constant 0 : i32
    %c0_i32_0 = arith.constant 0 : i32
    %c0_i32_1 = arith.constant 0 : i32
    return %c0_i32, %c0_i32_0 : i32, i32
  }
  func.func @transform_2(%arg0: i32) -> (i32, i32, i32) {
    %c0_i32 = arith.constant 0 : i32
    %c0_i32_0 = arith.constant 0 : i32
    %c0_i32_1 = arith.constant 0 : i32
    return %arg0, %c0_i32, %c0_i32_0 : i32, i32, i32
  }
  func.func @transform_3(%arg0: i32) -> (i32, i32, i32) {
    %c0_i32 = arith.constant 0 : i32
    %c0_i32_0 = arith.constant 0 : i32
    %c0_i32_1 = arith.constant 0 : i32
    return %arg0, %c0_i32, %c0_i32_0 : i32, i32, i32
  }
  func.func @transform_4(%arg0: i32) -> (i32, i32, i32) {
    %c0_i32 = arith.constant 0 : i32
    %c0_i32_0 = arith.constant 0 : i32
    %c0_i32_1 = arith.constant 0 : i32
    return %arg0, %c0_i32, %c0_i32_0 : i32, i32, i32
  }
  func.func @transform_5(%arg0: i32) -> (i32, i32, i32) {
    %c0_i32 = arith.constant 0 : i32
    %c0_i32_0 = arith.constant 0 : i32
    %c0_i32_1 = arith.constant 0 : i32
    return %arg0, %c0_i32, %c0_i32_0 : i32, i32, i32
  }
  func.func @transform_6(%arg0: i32) -> (i32, i32, i32) {
    %c0_i32 = arith.constant 0 : i32
    %c0_i32_0 = arith.constant 0 : i32
    %c0_i32_1 = arith.constant 0 : i32
    return %arg0, %c0_i32, %c0_i32_0 : i32, i32, i32
  }
}

</mosaic_0001>

<bundles_post_ra>
// kernel: tpu_custom_call.1
= control target key start
LH: loop header
LB: loop body
LE: loop exit
PB: predicated region body
PF: predicated region fallthrough
CT: control target
= control target key end

     0   :  { %12 = vsyncpa [#allocation3], 0  ;;  %s1151_s0 = inlined_call_operand.hbm [shape: f32[2,1,128], index: 0, kind: input, shape index: {}]   ;;  %s1152_s1 = inlined_call_operand.hbm [shape: f32[1,128], index: 1, kind: input, shape index: {}]   ;;  %s1153_s2 = inlined_call_operand.hbm [shape: f32[2,4,4], index: 2, kind: input, shape index: {}]   ;;  %s1154_s3 = inlined_call_operand.hbm [shape: f32[2,4,4], index: 3, kind: input, shape index: {}]   ;;  %s1155_s4 = inlined_call_operand.vmem [shape: f32[2,1,1], index: 4, kind: output, shape index: {0}]   ;;  %s1156_s5 = inlined_call_operand.vmem [shape: f32[2,1,1], index: 5, kind: output, shape index: {1}]   ;;  %s1157_s6 = inlined_call_operand.vmem [shape: f32[2,1,1], index: 6, kind: output, shape index: {2}]  }
   0x1   :  { %14 = vsyncpa [#allocation3 + $0x1], 0 }
   0x2   :  { %15 = vsyncpa [#allocation5], 0  ;;  %s972_s21 = smov 0   ;;  %s974_s22 = smov 0  }
   0x3   :  { %s976_s23 = smov 0   ;;  %s978_s24 = smov 0  }
   0x4 LB: > { %s993_s25 = sadd.s32 1, %s934_s24   ;;  %s28_s26 = sadd.s32 1, %s930_s23  ;;  %s934_s24 = sphi %s978_s24, %s1164_s24   ;;  %s930_s23 = sphi %s976_s23, %s1163_s23   ;;  %s926_s22 = sphi %s974_s22, %s1162_s22   ;;  %s922_s21 = sphi %s972_s21, %s1161_s21  }
   0x5   : > { %s25_s27 = ssub.s32 %s934_s24, %s993_s25  ;;  %p35_p0 = scmp.ne.s32.totalorder %s930_s23, %s926_s22 }
   0x6   : > { %p26_p1 = scmp.eq.s32.totalorder %s25_s27, 0  ;;  %p36_p2 = scmp.eq.s32.totalorder %s934_s24, 0 }
   0x7   : > { %p727_p3 = scmp.lt.s32.totalorder %s934_s24, 2  ;;  %s228_s29 = sand.u32 1, %s934_s24  }
   0x8   : > { %s1003_s28 = scalar_select %p26_p1, %s930_s23, %s28_s26  }
   0x9   : > { %p37_p4 = por %p36_p2, %p35_p0  ;;  %s230_s30 = sand.u32 1, %s930_s23  }
   0xa   : > { %s234_s9 = scalar_lea.hbm %s1151_s0, %s934_s24  ;;  %s231_s11 = scalar_lea.vmem [#allocation2], %s230_s30 }
   0xb   : > { %s236_s10 = sshll.u32 %s234_s9, 4  ;;  %s238_s12 = sshll.u32 %s231_s11, 4  ;;  %s237_s10 = int_to_ptr.hbm [resolvable:$true] %s236_s10  ;;  %s239_s12 = int_to_ptr.vmem [resolvable:$true] %s238_s12 }
   0xc   : > { %p1011_p5 = pnand %p727_p3, %p37_p4  ;;  %s1015_s14 = sshll.u32 %s230_s30, 2 }
   0xd   : > { %s689_s15 = sshll.u32 %s934_s24, 2  ;;  %s1023_s19 = scalar_lea.sflag [#allocation3], %s228_s29 }
   0xe   : > { %s253_s18 = scalar_lea.hbm %s1153_s2, %s689_s15  ;;  %s772_s20 = sshra.s32 %s237_s10, 4  ;;  %s773_s20 = int_to_ptr.hbm [resolvable:$true] %s772_s20 }
   0xf   : > { %s774_s26 = scalar_lea.hbm %s773_s20, 1  ;;  %p776_p7 = pneg %p1011_p5 }
  0x10   : > { %p775_p6 = scmp.ne.s32.totalorder %s773_s20, %s774_s26  ;;  %s779_s7 = scalar_lea.hbm %s1151_s0, 2 }
  0x11   : > { %p780_p10 = scmp.lt.s32.totalorder %s773_s20, %s1151_s0  ;;  %p781_p11 = scmp.lt.s32.totalorder %s779_s7, %s774_s26 }
  0x12   : > { %p777_p8 = pnand %p776_p7, %p775_p6 }
  0x13   : > { %p782_p12 = por %p781_p11, %p780_p10 }
  0x14   : > { %p778_p9 = pneg %p777_p8 }
  0x16   : > { %p783_p13 = pnand %p782_p12, %p778_p9 }
  0x18   : > { %786 = shalt.err (!%p783_p13)
}
  0x19   : > { %719 = dma.hbm_to_vmem [thread:$0]  (!%p1011_p5), %s237_s10, 16, %s239_s12, %s1023_s19  }
  0x1a   : > { %s255_s29 = sshll.u32 %s253_s18, 4  ;;  %s249_s11 = scalar_lea.vmem [#allocation6], %s1015_s14  ;;  %s256_s29 = int_to_ptr.hbm [resolvable:$true] %s255_s29 }
  0x1b   : > { %s257_s16 = sshll.u32 %s249_s11, 4  ;;  %s802_s17 = sshra.s32 %s256_s29, 4  ;;  %s258_s16 = int_to_ptr.vmem [resolvable:$true] %s257_s16  ;;  %s803_s17 = int_to_ptr.hbm [resolvable:$true] %s802_s17 }
  0x1c   : > { %s804_s27 = scalar_lea.hbm %s803_s17, 4  ;;  %s809_s30 = scalar_lea.hbm %s1153_s2, 8 }
  0x1d   : > { %p805_p0 = scmp.ne.s32.totalorder %s803_s17, %s804_s27  ;;  %p810_p3 = scmp.lt.s32.totalorder %s803_s17, %s1153_s2 }
  0x1e   : > { %p811_p4 = scmp.lt.s32.totalorder %s809_s30, %s804_s27 }
  0x1f   : > { %p807_p1 = pnand %p805_p0, %p776_p7 }
  0x20   : > { %p812_p6 = por %p811_p4, %p810_p3 }
  0x21   : > { %p808_p2 = pneg %p807_p1 }
  0x23   : > { %p813_p8 = pnand %p812_p6, %p808_p2 }
  0x25   : > { %816 = shalt.err (!%p813_p8)
}
  0x26   : > { %722 = dma.hbm_to_vmem [thread:$0]  (!%p1011_p5), %s256_s29, 64, %s258_s16, %s1023_s19  }
  0x27   : > { %s1053_s10 = sadd.s32 4294967295, %s934_s24   ;;  %p41_p10 = scmp.ne.s32.totalorder %s926_s22, %s922_s21 }
  0x28   : > { %p42_p9 = scmp.eq.s32.totalorder %s1053_s10, 0  ;;  %p685_p11 = scmp.ge.s32.totalorder %s934_s24, 1 }
  0x29   : > { %p203_p12 = scmp.lt.s32.totalorder %s934_s24, 3  ;;  %s215_s11 = sshll.u32 %s1152_s1, 4  ;;  %s216_s11 = int_to_ptr.hbm [resolvable:$true] %s215_s11 }
  0x2a   : > { %p1062_p13 = por %p42_p9, %p41_p10  ;;  %s936_s21 = smov [#allocation4]  }
  0x2b   : > { %p1069_p0 = pnand %p685_p11, %p203_p12  ;;  %s217_s16 = sshll.u32 %s936_s21, 4  ;;  %s218_s16 = int_to_ptr.vmem [resolvable:$true] %s217_s16 }
  0x2c   : > { %s272_s20 = scalar_lea.hbm %s1154_s3, %s689_s15  ;;  %s268_s30 = scalar_lea.vmem [#allocation7], %s1015_s14 }
  0x2d   : > { %p712_p1 = pneg %p1069_p0  ;;  %s274_s26 = sshll.u32 %s272_s20, 4  ;;  %s275_s26 = int_to_ptr.hbm [resolvable:$true] %s274_s26 }
  0x2e   : > { %s276_s7 = sshll.u32 %s268_s30, 4  ;;  %s862_s8 = sshra.s32 %s275_s26, 4  ;;  %s277_s7 = int_to_ptr.vmem [resolvable:$true] %s276_s7  ;;  %s863_s8 = int_to_ptr.hbm [resolvable:$true] %s862_s8 }
  0x2f   : > { %p713_p2 = pnand %p712_p1, %p42_p9  ;;  %s864_s18 = scalar_lea.hbm %s863_s8, 4 }
  0x30   : > { %p865_p3 = scmp.ne.s32.totalorder %s863_s8, %s864_s18  ;;  %s869_s15 = scalar_lea.hbm %s1154_s3, 8 }
  0x31   : > { %715 = dma.hbm_to_vmem [thread:$0]  (!%p713_p2), %s216_s11, 16, %s218_s16, [#allocation5]  }
  0x32   : > { %p867_p4 = pnand %p865_p3, %p776_p7  ;;  %p870_p8 = scmp.lt.s32.totalorder %s863_s8, %s1154_s3 }
  0x33   : > { %p871_p10 = scmp.lt.s32.totalorder %s869_s15, %s864_s18 }
  0x34   : > { %p868_p6 = pneg %p867_p4 }
  0x35   : > { %p872_p11 = por %p871_p10, %p870_p8 }
  0x37   : > { %p873_p12 = pnand %p872_p11, %p868_p6 }
  0x39   : > { %876 = shalt.err (!%p873_p12)
}
  0x3a   : > { %725 = dma.hbm_to_vmem [thread:$0]  (!%p1011_p5), %s275_s26, 64, %s277_s7, %s1023_s19  }
  0x3b   : > { %285 = sbr.rel (%p1069_p0) target bundleno = 297 (0x129), region = 36  ;;  %s287_s14 = sand.u32 (!%p1069_p0), 1, %s1053_s10  }
  0x3c   : > { %s289_s11 = sand.u32 (!%p1069_p0), 1, %s926_s22   ;;  %s288_s16 = scalar_lea.sflag (!%p1069_p0), [#allocation3], %s287_s14 }
  0x3d   : > { %s1099_s27 = scalar_lea.vmem (!%p1069_p0), [#allocation2], %s289_s11 }
  0x40   : > { %909 = dma.done.wait (%p1062_p13), %s288_s16, 16  }
  0x41   : > { %911 = vsyncadd (%p1062_p13), %s288_s16, 4294967280 }
  0x42   : > { %913 = dma.done.wait (%p42_p9), [#allocation5], 16  }
  0x43   : > { %915 = vsyncadd (%p42_p9), [#allocation5], 4294967280  ;;  %s694_s13 = sshll.u32 %s289_s11, 2 }
  0x44   : > { %s305_s19 = scalar_lea.vmem [#allocation6], %s694_s13 }
  0x45   : > { %917 = dma.done.wait (%p1062_p13), %s288_s16, 128  }
  0x46   : > { %919 = vsyncadd (%p1062_p13), %s288_s16, 4294967168  ;;  %v424_v0 = vld [vmem:[%s305_s19] sm:$0xf]  ;;  %s315_s29 = scalar_lea.vmem [#allocation7], %s694_s13  ;;  %vm428_vm0 = vcmask 27648   ;;  %vm516_vm11 = vcmask 24576  }
  0x47   : > { %v425_v1 = vld [vmem:[%s315_s29] sm:$0xf]  ;;  %v441_v3 = vmul.f32 0.5, %v424_v0  ;;  %v1114_v30 = vld [vmem:[%s1099_s27] sm:$0x1]  ;;  %p358_p5 = scmp.lt.s32.totalorder %s1053_s10, 1 }
  0x48   : > { %v426_v2 = vsub.f32 %v424_v0, %v425_v1  ;;  %v447_v4 = vmul.f32 0.5, %v425_v1  ;;  %v369_v31 = vand.u32 2147483647, %v1114_v30  ;;  %vm389_vm14 = vcmp.ge.f32.partialorder %v1114_v30, 0.0 }
  0x49   : > { %v443_v6 = vrot.slane %v441_v3, 2  ;;  %s1166_s10 = smov (!%p358_p5, %s1053_s10), 1 }
  0x4a   : > { %v427_v5 = vand.u32 2147483647, %v426_v2  ;;  %v449_v7 = vrot.slane %v447_v4, 2  ;;  %v370_v34 = vsub.f32 0.0, %v369_v31  ;;  %s363_s26 = scalar_lea.vmem %s1156_s5, %s1166_s10  ;;  %s360_s18 = scalar_lea.vmem %s1155_s4, %s1166_s10 }
  0x4b   : > { %v445_v9 = vsub.f32 %v424_v0, %v443_v6  ;;  %v446_v10 = vadd.f32 %v443_v6, %v424_v0  ;;  %s366_s15 = scalar_lea.vmem %s1157_s6, %s1166_s10 }
  0x4c   : > { %v429_v8 = vsel %vm428_vm0, %v427_v5, 0.0  ;;  %v451_v11 = vsub.f32 %v425_v1, %v449_v7  ;;  %v452_v12 = vadd.f32 %v449_v7, %v425_v1  ;;  %v371_v37 = vmul.f32 1.442695, %v370_v34 }
  0x4d   : > { %430 = vadd.xlane.f32.xlu0 %v429_v8  ;;  %v453_v13 = vsub.f32 %v446_v10, %v445_v9  ;;  %vm417_vm0 = vcmask 1040384  }
  0x4e   : > { %v463_v14 = vmax.f32 %v445_v9, %v451_v11  ;;  %v489_v15 = vmin.f32 %v445_v9, %v451_v11  ;;  %v458_v16 = vsub.f32 %v452_v12, %v451_v11  ;;  %v464_v17 = vmin.f32 %v446_v10, %v452_v12 }
  0x4f   : > { %v490_v18 = vmax.f32 %v446_v10, %v452_v12  ;;  %v455_v19 = vrot.slane %v453_v13, 1  ;;  %v368_v12 = vld [vmem:[#allocation4] sm:$0x1] }
  0x50   : > { %v460_v20 = vrot.slane %v458_v16, 1  ;;  %v465_v21 = vsub.f32 %v464_v17, %v463_v14 }
  0x51   : > { %v491_v22 = vsub.f32 %v490_v18, %v489_v15  ;;  %v457_v23 = vmul.f32 %v455_v19, %v453_v13  ;;  %v392_v19 = vmax.f32 %v1114_v30, 0.0 }
  0x52   : > { %v462_v24 = vmul.f32 %v460_v20, %v458_v16  ;;  %v466_v25 = vmax.f32 %v465_v21, 0.0  ;;  %v393_v20 = vmul.f32 %v368_v12, %v1114_v30  ;;  %v407_v21 = vsub.f32 1.0, %v368_v12 }
  0x53   : > { %v492_v26 = vmax.f32 %v491_v22, 0.0 }
  0x54   : > { %v468_v27 = vrot.slane %v466_v25, 1  ;;  %v471_v28 = vadd.f32 %v462_v24, %v457_v23 }
  0x55   : > { %v494_v29 = vrot.slane %v492_v26, 1 }
  0x56   : > { %v470_v32 = vmul.f32 %v468_v27, %v466_v25  ;;  %v394_v27 = vsub.f32 %v392_v19, %v393_v20 }
  0x57   : > { %v496_v33 = vmul.f32 %v494_v29, %v492_v26 }
  0x58   : > { %v472_v35 = vsub.f32 %v471_v28, %v470_v32 }
  0x59   : > { %v498_v36 = vadd.f32 1e-07, %v496_v33 }
  0x5a   : > { %v473_v38 = vadd.f32 1e-07, %v472_v35  ;;  %v497_v54 = vsub.f32 %v496_v33, %v472_v35  ;;  %v414_v33 = vmul.f32 0.75, %v407_v21 }
  0x5b   : > { %762 = vrcp.f32 %v498_v36  ;;  %vm504_vm1 = vweird.f32 %v498_v36  ;;  %v510_v43 = vand.u32 2147483648, %v498_v36  ;;  %v508_v47 = vand.u32 2147483647, %v498_v36 }
  0x5c   : > { %764 = vpow2.f32 %v371_v37  ;;  %vm479_vm3 = vweird.f32 %v473_v38  ;;  %v485_v48 = vand.u32 2147483648, %v473_v38  ;;  %v483_v50 = vand.u32 2147483647, %v473_v38 }
  0x5d   : > { %766 = vrcp.f32 %v473_v38  ;;  %v511_v52 = vor.u32 1.1754944e-38, %v510_v43  ;;  %vm509_vm6 = vcmp.eq.f32.partialorder %v508_v47, 8.507059e+37 }
  0x5e   : > { %v486_v56 = vor.u32 1.1754944e-38, %v485_v48  ;;  %vm484_vm8 = vcmp.eq.f32.partialorder %v483_v50, 8.507059e+37 }
  0x61   : > { %v763_v39 = vpop.eup %762 }
  0x62   : > { %v1117_v40 = vpop.eup %764  ;;  %v500_v41 = vmul.f32 %v763_v39, %v498_v36  ;;  %vm505_vm2 = vweird.f32 %v763_v39 }
  0x63   : > { %v767_v42 = vpop.eup %766  ;;  %v373_v44 = vadd.f32 1.0, %v1117_v40  ;;  %vm506_vm5 = vmor %vm504_vm1, %vm505_vm2  ;;  %v398_v7 = vmul.f32 -0.5, %v1117_v40  ;;  %v401_v17 = vand.u32 2147483647, %v1117_v40  ;;  %vm422_vm1 = vcmask 0  }
  0x64   : > { %v475_v45 = vmul.f32 %v767_v42, %v473_v38  ;;  %v501_v46 = vsub.f32 1.0, %v500_v41  ;;  %vm480_vm4 = vweird.f32 %v767_v42 }
  0x65   : > { %768 = vrcp.f32 %v373_v44  ;;  %vm481_vm7 = vmor %vm479_vm3, %vm480_vm4  ;;  %vm379_vm9 = vweird.f32 %v373_v44  ;;  %v385_v1 = vand.u32 2147483648, %v373_v44  ;;  %v383_v4 = vand.u32 2147483647, %v373_v44 }
  0x66   : > { %v476_v49 = vsub.f32 1.0, %v475_v45  ;;  %v502_v51 = vmul.f32 %v763_v39, %v501_v46  ;;  %770 = vlog2.f32 %v373_v44  ;;  %v399_v14 = vadd.f32 1.0, %v398_v7 }
  0x67   : > { %v386_v8 = vor.u32 1.1754944e-38, %v385_v1  ;;  %vm384_vm13 = vcmp.eq.f32.partialorder %v383_v4, 8.507059e+37  ;;  %vm402_vm15 = vcmp.lt.f32.partialorder %v401_v17, 0.0004427343 }
  0x68   : > { %v477_v53 = vmul.f32 %v767_v42, %v476_v49  ;;  %v503_v55 = vadd.f32 %v763_v39, %v502_v51  ;;  %v400_v24 = vmul.f32 %v1117_v40, %v399_v14 }
  0x6a   : > { %v478_v57 = vadd.f32 %v767_v42, %v477_v53  ;;  %v507_v58 = vsel %vm506_vm5, %v763_v39, %v503_v55 }
  0x6b   : > { %v769_v59 = vpop.eup %768  ;;  %v512_v60 = vsel %vm509_vm6, %v511_v52, %v507_v58 }
  0x6c   : > { %v482_v61 = vsel %vm481_vm7, %v767_v42, %v478_v57  ;;  %v513_v62 = vmul.f32 %v512_v60, %v497_v54  ;;  %v375_v63 = vmul.f32 %v769_v59, %v373_v44  ;;  %vm380_vm10 = vweird.f32 %v769_v59  ;;  %v771_v15 = vpop.eup %770 }
  0x6d   : > { %v487_v0 = vsel %vm484_vm8, %v486_v56, %v482_v61  ;;  %vm381_vm12 = vmor %vm379_vm9, %vm380_vm10  ;;  %v397_v23 = vmul.f32 0.6931472, %v771_v15 }
  0x6e   : > { %v488_v2 = vmul.f32 %v487_v0, %v470_v32  ;;  %v376_v3 = vsub.f32 1.0, %v375_v63  ;;  %v413_v32 = vmul.f32 0.25, %v368_v12 }
  0x6f   : > { %v403_v29 = vsel %vm402_vm15, %v400_v24, %v397_v23 }
  0x70   : > { %v514_v5 = vsub.f32 %v488_v2, %v513_v62  ;;  %v377_v6 = vmul.f32 %v769_v59, %v376_v3  ;;  %v404_v34 = vadd.f32 %v403_v29, %v394_v27  ;;  %v415_v37 = vadd.f32 %v414_v33, %v413_v32 }
  0x72   : > { %v515_v9 = vsub.f32 1.0, %v514_v5  ;;  %v378_v10 = vadd.f32 %v769_v59, %v377_v6 }
  0x74   : > { %v517_v11 = vsel %vm516_vm11, %v515_v9, 0.0  ;;  %v382_v13 = vsel %vm381_vm12, %v769_v59, %v378_v10 }
  0x75   : > { %518 = vadd.xlane.f32.xlu0 %v517_v11  ;;  %v387_v16 = vsel %vm384_vm13, %v386_v8, %v382_v13 }
  0x76   : > { %v390_v18 = vmul.f32 %v1117_v40, %v387_v16 }
  0x78   : > { %v391_v22 = vsel %vm389_vm14, %v387_v16, %v390_v18 }
  0x79   : > { %v405_v25 = vmul.f32 %v391_v22, %v368_v12  ;;  %v406_v26 = vsub.f32 1.0, %v391_v22 }
  0x7b   : > { %v408_v28 = vmul.f32 %v407_v21, %v406_v26 }
  0x7d   : > { %v409_v31 = vadd.f32 %v408_v28, %v405_v25 }
  0x7f   : > { %v410_v35 = vsub.f32 1.0, %v409_v31 }
  0x81   : > { %v411_v36 = vmul.f32 %v410_v35, %v410_v35 }
  0x83   : > { %v412_v38 = vmul.f32 %v411_v36, %v404_v34 }
  0x85   : > { %v416_v30 = vmul.f32 %v415_v37, %v412_v38 }
  0x87   : > { %v418_v39 = vsel %vm417_vm0, %v416_v30, 0.0 }
  0x88   : > { %419 = vadd.xlane.f32.xlu1 %v418_v39 }
  0xc0   : > { %v431_v41 = vpop.xlane.xlu0 %430 }
  0xc1   : > { %v432_v40 = vrot.slane %v431_v41, 4 }
  0xc3   : > { %v433_v42 = vadd.f32 %v432_v40, %v431_v41 }
  0xc5   : > { %v434_v43 = vrot.slane %v433_v42, 2 }
  0xc7   : > { %v435_v44 = vadd.f32 %v434_v43, %v433_v42 }
  0xc9   : > { %v436_v45 = vrot.slane %v435_v44, 1 }
  0xcb   : > { %v437_v46 = vadd.f32 %v436_v45, %v435_v44 }
  0xcd   : > { %698 = vpush %v437_v46 }
  0xe8   : > { %v519_v47 = vpop.xlane.xlu0 %518 }
  0xe9   : > { %v520_v48 = vrot.slane %v519_v47, 4 }
  0xeb   : > { %v521_v49 = vadd.f32 %v520_v48, %v519_v47 }
  0xed   : > { %v522_v50 = vrot.slane %v521_v49, 2 }
  0xef   : > { %v523_v51 = vadd.f32 %v522_v50, %v521_v49 }
  0xf1   : > { %v524_v52 = vrot.slane %v523_v51, 1 }
  0xf3   : > { %v525_v53 = vadd.f32 %v524_v52, %v523_v51 }
  0xf5   : > { %700 = vpush %v525_v53 }
  0xfb   : > { %v420_v55 = vpop.xlane.xlu1 %419 }
  0xfc   : > { %423 = vst.msk [vmem:[%s360_s18] sm:$0x1] %vm422_vm1, %v420_v55 }
  0xfe   : > { %s699_s30 = spop %698 }
  0xff   : > { %v439_v54 = vstv %s699_s30 }
 0x100   : > { %440 = vst.msk [vmem:[%s363_s26] sm:$0x1] %vm422_vm1, %v439_v54 }
 0x126   : > { %s701_s21 = spop %700 }
 0x127   : > { %v527_v56 = vstv %s701_s21 }
 0x128   : > { %528 = vst.msk [vmem:[%s366_s15] sm:$0x1] %vm422_vm1, %v527_v56 }
 0x129 PF: > { %p18_p7 = scmp.ge.s32.totalorder %s993_s25, 4   ;;  %s1161_s21 = smov %s926_s22 }
 0x12a   : > { %s1162_s22 = smov %s930_s23  ;;  %s1163_s23 = smov %s1003_s28 }
 0x12b   : > { %s1164_s24 = smov %s993_s25  ;;  %20 = sbr.rel (!%p18_p7) target bundleno = 4 (0x4), region = 126 }
 0x130   :  { %570 = vsyncpa [#allocation3], 1 }
 0x131   :  { %572 = vsyncpa [#allocation3 + $0x1], 1 }
 0x132   :  { %573 = vsyncpa [#allocation5], 1 }

</bundles_post_ra>
